<compile_context>
chip_gen: v7x
topology: tpu7x:2x2x1
jax: 0.10.0
libtpu: 0.0.40
codegen_flags: <defaults>
</compile_context>

<pallas_src>
import functools

import jax
import jax.numpy as jnp
import numpy as np
from jax.experimental import pallas as pl
from jax.experimental.pallas import tpu as pltpu

BN_EPS = 1e-5
_LANE = 128


def _round_up(x, m):
    return (x + m - 1) // m * m


def _vmem_capacity_bytes():
    try:
        cap = getattr(pltpu.get_tpu_info(), "vmem_capacity_bytes", None)
        if cap:
            return int(cap)
    except Exception:
        pass
    return 64 * 1024 * 1024  # conservative default (v7x per-core VMEM)


def _vmem_need_bytes(tm, tk, cp, in_itemsize):
    # double-buffered patch tile + (conservatively double-buffered) weight block
    # + f32 output tile (resident/double-buffered) + per-tile stats block
    return (2 * tm * tk * in_itemsize
            + 2 * tk * cp * in_itemsize
            + 2 * tm * cp * 4
            + 2 * 2 * cp * 4)


def _make_gemm_stats_kernel(n_k):
    """(tm, tk) @ (tk, Cp) accumulated over the K grid axis into the resident f32 output
    block, plus per-tile per-channel sum / sum-of-squares (BN training-stat partials)."""

    def kernel(p_ref, w_ref, y_ref, stats_ref):
        if n_k == 1:
            y = jnp.dot(p_ref[...], w_ref[...], preferred_element_type=jnp.float32)
            y_ref[...] = y
            su = jnp.sum(y, axis=0, keepdims=True)       # (1, Cp)
            sq = jnp.sum(y * y, axis=0, keepdims=True)   # (1, Cp)
            stats_ref[...] = jnp.concatenate([su, sq], axis=0)[None]
        else:
            k = pl.program_id(1)

            @pl.when(k == 0)
            def _():
                y_ref[...] = jnp.zeros_like(y_ref)

            y_ref[...] += jnp.dot(p_ref[...], w_ref[...],
                                  preferred_element_type=jnp.float32)

            @pl.when(k == n_k - 1)
            def _():
                y = y_ref[...]
                su = jnp.sum(y, axis=0, keepdims=True)
                sq = jnp.sum(y * y, axis=0, keepdims=True)
                stats_ref[...] = jnp.concatenate([su, sq], axis=0)[None]

    return kernel


def conv2d_bn_forward(x, weight, bias, gamma, beta, *, stride=1, padding=0,
                      bn=True, activation_fn=None, tm=512, use_bf16_mxu=False):
    """Conv2d(stride, padding, dilation=1, groups=1) [+ BatchNorm2d training stats], NCHW."""
    N, Cin, H, W = x.shape
    Cout, Cin_w, KH, KW = weight.shape
    assert Cin == Cin_w, "groups != 1 not supported"  # TODO(synk): grouped / dilated conv
    Hout = (H + 2 * padding - KH) // stride + 1
    Wout = (W + 2 * padding - KW) // stride + 1
    M = N * Hout * Wout
    K = Cin * KH * KW
    Cp = _round_up(Cout, _LANE)           # lane-dense output stores / MXU N dim

    in_item = 2 if use_bf16_mxu else 4

    # --- generation-aware VMEM plan ---
    vmem_cap = _vmem_capacity_bytes()
    vmem_limit = max(32 * 1024 * 1024, min(int(vmem_cap * 0.75), 100 * 1024 * 1024))
    budget = int(vmem_limit * 0.85)

    # Tile K only if a single resident (K, Cp) weight block + a modest patch tile won't fit.
    tk, Kp = K, K
    if _vmem_need_bytes(128, K, Cp, in_item) > budget:
        tk = 512
        while tk > _LANE and _vmem_need_bytes(128, tk, Cp, in_item) > budget:
            tk //= 2
        Kp = _round_up(K, tk)
    n_k = Kp // tk

    tm = max(8, min(_round_up(tm, 8), _round_up(M, 8)))
    while tm > 64 and _vmem_need_bytes(tm, tk, Cp, in_item) > budget:
        tm = _round_up(tm // 2, 8)
    Mp = _round_up(M, tm)
    n_m = Mp // tm

    # --- glue: im2col (patch extraction) in plain JAX ---
    # TODO(synk): replace with in-kernel implicit GEMM to avoid the KH*KW-x HBM blowup.
    x_pad = jnp.pad(x, ((0, 0), (0, 0), (padding, padding), (padding, padding)))
    cols = []
    for kh in range(KH):
        for kw in range(KW):
            cols.append(
                x_pad[:, :, kh:kh + Hout * stride:stride, kw:kw + Wout * stride:stride])
    patches = jnp.stack(cols, axis=2)                          # (N, Cin, KH*KW, Hout, Wout)
    patches = patches.transpose(0, 3, 4, 1, 2).reshape(M, K)   # rows (N,Ho,Wo); cols (Cin,kh,kw)
    w2d = weight.reshape(Cout, K).T                            # (K, Cout), matching K order

    # Zero padding only where required: pad rows/cols contribute exactly zero to GEMM & stats.
    if Mp != M or Kp != K:
        patches = jnp.pad(patches, ((0, Mp - M), (0, Kp - K)))
    w2d = jnp.pad(w2d, ((0, Kp - K), (0, Cp - Cout)))

    if use_bf16_mxu:
        # Halves patch/weight DMA bytes and uses the bf16 MXU path; GEMM still accumulates f32.
        patches = patches.astype(jnp.bfloat16)
        w2d = w2d.astype(jnp.bfloat16)

    # --- Pallas: tiled, pipelined GEMM + per-tile partial BN stats ---
    y_pad, partial_stats = pl.pallas_call(
        _make_gemm_stats_kernel(n_k),
        out_shape=(
            jax.ShapeDtypeStruct((Mp, Cp), jnp.float32),
            jax.ShapeDtypeStruct((n_m, 2, Cp), jnp.float32),
        ),
        grid=(n_m, n_k),
        in_specs=[
            pl.BlockSpec((tm, tk), lambda i, k: (i, k)),
            pl.BlockSpec((tk, Cp), lambda i, k: (k, 0)),   # weight VMEM-resident when n_k == 1
        ],
        out_specs=(
            pl.BlockSpec((tm, Cp), lambda i, k: (i, 0)),   # resident across k -> accumulator
            pl.BlockSpec((1, 2, Cp), lambda i, k: (i, 0, 0)),
        ),
        compiler_params=pltpu.CompilerParams(
            dimension_semantics=("parallel", "arbitrary"),
            vmem_limit_bytes=vmem_limit,
        ),
    )(patches, w2d)

    # --- glue: O(Cout) stats -> (scale, shift); epilogue FMA fused by XLA into the
    #     slice + NCHW transpose it already performs (no extra HBM round trip) ---
    stats = jnp.sum(partial_stats, axis=0)                   # (2, Cp) exact global sums
    if bn:
        # TODO(synk): sum/sumsq variance can cancel catastrophically at very large M with
        #             biased activations; switch to a compensated scheme if tolerances tighten.
        mean = stats[0, :Cout] / M
        var = jnp.maximum(stats[1, :Cout] / M - mean * mean, 0.0)
        scale = gamma.astype(jnp.float32) * jax.lax.rsqrt(var + BN_EPS)
        shift = beta.astype(jnp.float32) - mean * scale      # conv bias cancels under BN
    else:
        scale = jnp.ones((Cout,), jnp.float32)
        shift = bias.astype(jnp.float32)

    y = y_pad[:M, :Cout] * scale[None, :] + shift[None, :]
    if activation_fn is not None:
        y = activation_fn(y)
    out = y.reshape(N, Hout, Wout, Cout).transpose(0, 3, 1, 2)
    return out.astype(x.dtype)


def _reference(x, weight, bias, gamma, beta, *, stride, padding):
    y = jax.lax.conv_general_dilated(
        x, weight,
        window_strides=(stride, stride),
        padding=((padding, padding), (padding, padding)),
        dimension_numbers=("NCHW", "OIHW", "NCHW"),
    ) + bias.reshape(1, -1, 1, 1)
    mean = y.mean(axis=(0, 2, 3), keepdims=True)
    var = ((y - mean) ** 2).mean(axis=(0, 2, 3), keepdims=True)
    y = (y - mean) * jax.lax.rsqrt(var + BN_EPS)
    return y * gamma.reshape(1, -1, 1, 1) + beta.reshape(1, -1, 1, 1)


if __name__ == "__main__":
    # Module config: Conv2d(in_channels=4, out_channels=8, kernel_size=3, stride=1,
    #                       padding=1, bias=True, bn=True, activation_fn=None)
    N, Cin, H, W = 2, 4, 16, 16
    Cout, KH, KW = 8, 3, 3
    stride, padding = 1, 1

    key = jax.random.PRNGKey(0)
    kx, kw, kb = jax.random.split(key, 3)

    x = jax.random.normal(kx, (N, Cin, H, W), dtype=jnp.float32)
    fan_in = Cin * KH * KW
    bound = 1.0 / np.sqrt(fan_in)
    weight = jax.random.uniform(kw, (Cout, Cin, KH, KW), jnp.float32, -bound, bound)
    bias = jax.random.uniform(kb, (Cout,), jnp.float32, -bound, bound)
    # Fresh BatchNorm2d: weight (gamma) = 1, bias (beta) = 0.
    gamma = jnp.ones((Cout,), jnp.float32)
    beta = jnp.zeros((Cout,), jnp.float32)

    fwd = jax.jit(functools.partial(conv2d_bn_forward, stride=stride, padding=padding,
                                    bn=True, tm=512))
    out = jax.block_until_ready(fwd(x, weight, bias, gamma, beta))

    ref = _reference(x, weight, bias, gamma, beta, stride=stride, padding=padding)
    if not np.allclose(np.asarray(out), np.asarray(ref), rtol=1e-4, atol=1e-4):
        raise AssertionError("Pallas conv+bn output mismatch vs reference")

    print("KERNEL_OK")
</pallas_src>

<mosaic_0001>
module attributes {stable_mosaic.version = 11 : i64} {
  func.func @kernel(%arg0: i32, %arg1: i32, %arg2: memref<512x36xf32, #tpu.memory_space<vmem>>, %arg3: memref<36x128xf32, #tpu.memory_space<vmem>>, %arg4: memref<512x128xf32, #tpu.memory_space<vmem>>, %arg5: memref<1x2x128xf32, #tpu.memory_space<vmem>>) attributes {dimension_semantics = [#tpu.dimension_semantics<parallel>, #tpu.dimension_semantics<arbitrary>], iteration_bounds = array<i64: 1, 1>, scalar_prefetch = 0 : i64, scratch_operands = 0 : i64, tpu.core_type = #tpu.core_type<tc>, window_params = [{transform_indices = @transform_0, window_bounds = array<i64: 512, 36>}, {transform_indices = @transform_1, window_bounds = array<i64: 36, 128>}, {transform_indices = @transform_2, window_bounds = array<i64: 512, 128>}, {transform_indices = @transform_3, window_bounds = array<i64: 1, 2, 128>}]} {
    %c0 = arith.constant 0 : index
    %c0_0 = arith.constant 0 : index
    %0 = vector.load %arg2[%c0, %c0_0] : memref<512x36xf32, #tpu.memory_space<vmem>>, vector<512x36xf32>
    %c0_1 = arith.constant 0 : index
    %c0_2 = arith.constant 0 : index
    %1 = vector.load %arg3[%c0_1, %c0_2] : memref<36x128xf32, #tpu.memory_space<vmem>>, vector<36x128xf32>
    %cst = arith.constant dense<0.000000e+00> : vector<512x128xf32>
    %2 = tpu.matmul %0, %1, %cst {dimension_numbers = #tpu.dot_dimension_numbers<[1], [0], [0], [1], [0, 0, 1, 1], [], []>} : vector<512x36xf32>, vector<36x128xf32>, vector<512x128xf32> -> vector<512x128xf32>
    %c0_3 = arith.constant 0 : index
    %c0_4 = arith.constant 0 : index
    %3 = vector.load %arg4[%c0_3, %c0_4] : memref<512x128xf32, #tpu.memory_space<vmem>>, vector<512x128xf32>
    tpu.vector_store %arg4[%c0_3, %c0_4], %2 {strides = array<i32>} : memref<512x128xf32, #tpu.memory_space<vmem>>, vector<512x128xf32>,
    %cst_5 = arith.constant dense<0.000000e+00> : vector<128xf32>
    %4 = vector.multi_reduction <add>, %2, %cst_5 [0] : vector<512x128xf32> to vector<128xf32>
    %5 = vector.shape_cast %4 : vector<128xf32> to vector<1x128xf32>
    %6 = arith.mulf %2, %2 : vector<512x128xf32>
    %cst_6 = arith.constant dense<0.000000e+00> : vector<128xf32>
    %7 = vector.multi_reduction <add>, %6, %cst_6 [0] : vector<512x128xf32> to vector<128xf32>
    %8 = vector.shape_cast %7 : vector<128xf32> to vector<1x128xf32>
    %9 = tpu.concatenate %5, %8 in 0 : vector<1x128xf32>, vector<1x128xf32> -> vector<2x128xf32>
    %10 = vector.shape_cast %9 : vector<2x128xf32> to vector<1x2x128xf32>
    %c0_7 = arith.constant 0 : index
    %c0_8 = arith.constant 0 : index
    %c0_9 = arith.constant 0 : index
    %11 = vector.load %arg5[%c0_7, %c0_8, %c0_9] : memref<1x2x128xf32, #tpu.memory_space<vmem>>, vector<1x2x128xf32>
    tpu.vector_store %arg5[%c0_7, %c0_8, %c0_9], %10 {strides = array<i32>} : memref<1x2x128xf32, #tpu.memory_space<vmem>>, vector<1x2x128xf32>,
    return
  }
  func.func @transform_0(%arg0: i32, %arg1: i32) -> (i32, i32) {
    %c0_i32 = arith.constant 0 : i32
    return %arg0, %arg1 : i32, i32
  }
  func.func @transform_1(%arg0: i32, %arg1: i32) -> (i32, i32) {
    %c0_i32 = arith.constant 0 : i32
    %c0_i32_0 = arith.constant 0 : i32
    return %arg1, %c0_i32 : i32, i32
  }
  func.func @transform_2(%arg0: i32, %arg1: i32) -> (i32, i32) {
    %c0_i32 = arith.constant 0 : i32
    %c0_i32_0 = arith.constant 0 : i32
    return %arg0, %c0_i32 : i32, i32
  }
  func.func @transform_3(%arg0: i32, %arg1: i32) -> (i32, i32, i32) {
    %c0_i32 = arith.constant 0 : i32
    %c0_i32_0 = arith.constant 0 : i32
    %c0_i32_1 = arith.constant 0 : i32
    return %arg0, %c0_i32, %c0_i32_0 : i32, i32, i32
  }
}

</mosaic_0001>

<bundles_post_ra>
// kernel: conv2d_bn_forward.1
= control target key start
LH: loop header
LB: loop body
LE: loop exit
PB: predicated region body
PF: predicated region fallthrough
CT: control target
= control target key end

     0   :  { %vm82_vm0 = vcmask 293888   ;;  %vm275_vm1 = vcmask 1043456   ;;  %vm930_vm2 = vcmask 1040384   ;;  %s1873_s1 = inlined_call_operand.vmem [shape: f32[36,128], index: 1, kind: input, shape index: {}]   ;;  %s1874_s0 = inlined_call_operand.vmem [shape: f32[512,36], index: 0, kind: input, shape index: {}]   ;;  %s1875_s2 = inlined_call_operand.vmem [shape: f32[512,128], index: 2, kind: output, shape index: {0}]   ;;  %s1876_s3 = inlined_call_operand.vmem [shape: f32[1,2,128], index: 3, kind: output, shape index: {1}]  }
   0x1   :  { %v77_v0 = vld [vmem:[%s1873_s1] sm:$0xff]  ;;  %v78_v1 = vld [vmem:[%s1873_s1 + $0x8] sm:$0xff]  ;;  %v79_v2 = vld [vmem:[%s1873_s1 + $0x10] sm:$0xff] }
   0x2   :  { %v1181_v3 = vpack.c.bf16 %v78_v1, %v77_v0  ;;  %v80_v4 = vld [vmem:[%s1873_s1 + $0x18] sm:$0xff]  ;;  %v13_v5 = vld [vmem:[%s1874_s0] sm:$0xff]  ;;  %v14_v8 = vld [vmem:[%s1874_s0 + $0x8] sm:$0xff] }
   0x3   :  { %v1185_v6 = vpack.c.bf16 %v80_v4, %v79_v2  ;;  %1085 = vmatprep.mubr.msk.f32.mxu0 %vm82_vm0, %v13_v5  ;;  %v81_v7 = vld [vmem:[%s1873_s1 + $0x20] sm:$0xf]  ;;  %v15_v9 = vld [vmem:[%s1874_s0 + $0x10] sm:$0xff]  ;;  %v46_v11 = vld [vmem:[%s1874_s0 + $0x108] sm:$0xff] }
   0x4   :  { %1182 = vmatprep.subr.bf16.mxu0 %v1181_v3  ;;  %1189 = vmatprep.subr.bf16.mxu1 %v1181_v3  ;;  %v45_v10 = vld [vmem:[%s1874_s0 + $0x100] sm:$0xff]  ;;  %v47_v12 = vld [vmem:[%s1874_s0 + $0x110] sm:$0xff]  ;;  %v16_v13 = vld [vmem:[%s1874_s0 + $0x18] sm:$0xff] }
   0x5   :  { %1184 = vmatpush3.bf16.msra.mxu0 %v1181_v3  ;;  %1192 = vmatpush3.bf16.msra.mxu1 %v1181_v3  ;;  %v17_v14 = vld [vmem:[%s1874_s0 + $0x20] sm:$0xff]  ;;  %v48_v15 = vld [vmem:[%s1874_s0 + $0x118] sm:$0xff]  ;;  %v18_v17 = vld [vmem:[%s1874_s0 + $0x28] sm:$0xff] }
   0x6   :  { %1186 = vmatprep.subr.bf16.mxu0 %v1185_v6  ;;  %1190 = vmatprep.subr.bf16.mxu1 %v1185_v6  ;;  %v49_v16 = vld [vmem:[%s1874_s0 + $0x120] sm:$0xff]  ;;  %v19_v18 = vld [vmem:[%s1874_s0 + $0x30] sm:$0xff]  ;;  %v50_v19 = vld [vmem:[%s1874_s0 + $0x128] sm:$0xff] }
   0x7   :  { %1133 = vmatprep.mubr.msk.f32.mxu1 %vm82_vm0, %v45_v10  ;;  %v51_v20 = vld [vmem:[%s1874_s0 + $0x130] sm:$0xff]  ;;  %v20_v21 = vld [vmem:[%s1874_s0 + $0x38] sm:$0xff]  ;;  %v21_v22 = vld [vmem:[%s1874_s0 + $0x40] sm:$0xff] }
   0x8   :  { %v52_v23 = vld [vmem:[%s1874_s0 + $0x138] sm:$0xff]  ;;  %v53_v24 = vld [vmem:[%s1874_s0 + $0x140] sm:$0xff]  ;;  %v22_v25 = vld [vmem:[%s1874_s0 + $0x48] sm:$0xff] }
   0x9   :  { %1188 = vmatpush3.bf16.msra.mxu0 %v1185_v6  ;;  %1193 = vmatpush3.bf16.msra.mxu1 %v1185_v6  ;;  %v23_v26 = vld [vmem:[%s1874_s0 + $0x50] sm:$0xff]  ;;  %v54_v27 = vld [vmem:[%s1874_s0 + $0x148] sm:$0xff]  ;;  %v24_v29 = vld [vmem:[%s1874_s0 + $0x58] sm:$0xff] }
   0xa   :  { %1083 = vmatprep.subr.msk.mxu0 %vm275_vm1, %v81_v7  ;;  %1191 = vmatprep.subr.msk.mxu1 %vm275_vm1, %v81_v7  ;;  %v55_v28 = vld [vmem:[%s1874_s0 + $0x150] sm:$0xff]  ;;  %v25_v30 = vld [vmem:[%s1874_s0 + $0x60] sm:$0xff]  ;;  %v56_v31 = vld [vmem:[%s1874_s0 + $0x158] sm:$0xff] }
   0xb   :  { %v57_v32 = vld [vmem:[%s1874_s0 + $0x160] sm:$0xff]  ;;  %v26_v33 = vld [vmem:[%s1874_s0 + $0x68] sm:$0xff]  ;;  %v27_v34 = vld [vmem:[%s1874_s0 + $0x70] sm:$0xff] }
   0xc   :  { %v58_v35 = vld [vmem:[%s1874_s0 + $0x168] sm:$0xff]  ;;  %v59_v36 = vld [vmem:[%s1874_s0 + $0x170] sm:$0xff]  ;;  %v28_v37 = vld [vmem:[%s1874_s0 + $0x78] sm:$0xff] }
   0xd   :  { %1084 = vmatpush3.msk.msra.mxu0 %vm275_vm1, %v81_v7  ;;  %1194 = vmatpush3.msk.msra.mxu1 %vm275_vm1, %v81_v7  ;;  %v29_v38 = vld [vmem:[%s1874_s0 + $0x80] sm:$0xff]  ;;  %v60_v39 = vld [vmem:[%s1874_s0 + $0x178] sm:$0xff]  ;;  %v30_v41 = vld [vmem:[%s1874_s0 + $0x88] sm:$0xff] }
   0xe   :  { %1086 = vmatmul.mubr.msk.f32.vlgmr.msra.gmra.mrb[0].mxu0 %vm82_vm0, %v14_v8  ;;  %1134 = vmatmul.mubr.msk.f32.vlgmr.msra.gmra.mrb[0].mxu1 %vm82_vm0, %v46_v11  ;;  %v61_v40 = vld [vmem:[%s1874_s0 + $0x180] sm:$0xff]  ;;  %v31_v42 = vld [vmem:[%s1874_s0 + $0x90] sm:$0xff]  ;;  %v62_v43 = vld [vmem:[%s1874_s0 + $0x188] sm:$0xff] }
   0xf   :  { %1088 = vmatprep.mubr.msk.f32.mxu0 %vm82_vm0, %v15_v9  ;;  %1136 = vmatprep.mubr.msk.f32.mxu1 %vm82_vm0, %v47_v12  ;;  %v63_v44 = vld [vmem:[%s1874_s0 + $0x190] sm:$0xff]  ;;  %v32_v45 = vld [vmem:[%s1874_s0 + $0x98] sm:$0xff]  ;;  %v33_v46 = vld [vmem:[%s1874_s0 + $0xa0] sm:$0xff] }
  0x10   :  { %v64_v47 = vld [vmem:[%s1874_s0 + $0x198] sm:$0xff]  ;;  %v65_v48 = vld [vmem:[%s1874_s0 + $0x1a0] sm:$0xff]  ;;  %v34_v49 = vld [vmem:[%s1874_s0 + $0xa8] sm:$0xff] }
  0x11   :  { %v35_v50 = vld [vmem:[%s1874_s0 + $0xb0] sm:$0xff]  ;;  %v66_v51 = vld [vmem:[%s1874_s0 + $0x1a8] sm:$0xff]  ;;  %v36_v53 = vld [vmem:[%s1874_s0 + $0xb8] sm:$0xff] }
  0x12   :  { %1089 = vmatmul.mubr.msk.f32.gmra.mrb[2].mxu0 %vm82_vm0, %v16_v13  ;;  %1137 = vmatmul.mubr.msk.f32.gmra.mrb[2].mxu1 %vm82_vm0, %v48_v15  ;;  %v67_v52 = vld [vmem:[%s1874_s0 + $0x1b0] sm:$0xff]  ;;  %v37_v54 = vld [vmem:[%s1874_s0 + $0xc0] sm:$0xff]  ;;  %v68_v55 = vld [vmem:[%s1874_s0 + $0x1b8] sm:$0xff] }
  0x13   :  { %1091 = vmatprep.mubr.msk.f32.mxu0 %vm82_vm0, %v17_v14  ;;  %1139 = vmatprep.mubr.msk.f32.mxu1 %vm82_vm0, %v49_v16  ;;  %v69_v56 = vld [vmem:[%s1874_s0 + $0x1c0] sm:$0xff]  ;;  %v38_v57 = vld [vmem:[%s1874_s0 + $0xc8] sm:$0xff]  ;;  %v39_v58 = vld [vmem:[%s1874_s0 + $0xd0] sm:$0xff] }
  0x14   :  { %v70_v59 = vld [vmem:[%s1874_s0 + $0x1c8] sm:$0xff]  ;;  %v71_v60 = vld [vmem:[%s1874_s0 + $0x1d0] sm:$0xff]  ;;  %v40_v61 = vld [vmem:[%s1874_s0 + $0xd8] sm:$0xff] }
  0x15   :  { %v41_v62 = vld [vmem:[%s1874_s0 + $0xe0] sm:$0xff]  ;;  %v72_v63 = vld [vmem:[%s1874_s0 + $0x1d8] sm:$0xff]  ;;  %v42_v1 = vld [vmem:[%s1874_s0 + $0xe8] sm:$0xff] }
  0x16   :  { %1092 = vmatmul.mubr.msk.f32.gmra.mrb[4].mxu0 %vm82_vm0, %v18_v17  ;;  %1140 = vmatmul.mubr.msk.f32.gmra.mrb[4].mxu1 %vm82_vm0, %v50_v19  ;;  %v73_v0 = vld [vmem:[%s1874_s0 + $0x1e0] sm:$0xff]  ;;  %v43_v2 = vld [vmem:[%s1874_s0 + $0xf0] sm:$0xff]  ;;  %v74_v3 = vld [vmem:[%s1874_s0 + $0x1e8] sm:$0xff] }
  0x17   :  { %1094 = vmatprep.mubr.msk.f32.mxu0 %vm82_vm0, %v19_v18  ;;  %1142 = vmatprep.mubr.msk.f32.mxu1 %vm82_vm0, %v51_v20  ;;  %v75_v4 = vld [vmem:[%s1874_s0 + $0x1f0] sm:$0xff]  ;;  %v44_v5 = vld [vmem:[%s1874_s0 + $0xf8] sm:$0xff] }
  0x18   :  { %v76_v6 = vld [vmem:[%s1874_s0 + $0x1f8] sm:$0xff] }
  0x1a   :  { %1095 = vmatmul.mubr.msk.f32.gmra.mrb[6].mxu0 %vm82_vm0, %v20_v21  ;;  %1143 = vmatmul.mubr.msk.f32.gmra.mrb[6].mxu1 %vm82_vm0, %v52_v23 }
  0x1b   :  { %1097 = vmatprep.mubr.msk.f32.mxu0 %vm82_vm0, %v21_v22  ;;  %1145 = vmatprep.mubr.msk.f32.mxu1 %vm82_vm0, %v53_v24 }
  0x1e   :  { %1098 = vmatmul.mubr.msk.f32.gmra.mrb[8].mxu0 %vm82_vm0, %v22_v25  ;;  %1146 = vmatmul.mubr.msk.f32.gmra.mrb[8].mxu1 %vm82_vm0, %v54_v27 }
  0x1f   :  { %1100 = vmatprep.mubr.msk.f32.mxu0 %vm82_vm0, %v23_v26  ;;  %1148 = vmatprep.mubr.msk.f32.mxu1 %vm82_vm0, %v55_v28 }
  0x22   :  { %1101 = vmatmul.mubr.msk.f32.gmra.mrb[10].mxu0 %vm82_vm0, %v24_v29  ;;  %1149 = vmatmul.mubr.msk.f32.gmra.mrb[10].mxu1 %vm82_vm0, %v56_v31 }
  0x23   :  { %1103 = vmatprep.mubr.msk.f32.mxu0 %vm82_vm0, %v25_v30  ;;  %1151 = vmatprep.mubr.msk.f32.mxu1 %vm82_vm0, %v57_v32 }
  0x26   :  { %1104 = vmatmul.mubr.msk.f32.gmra.mrb[12].mxu0 %vm82_vm0, %v26_v33  ;;  %1152 = vmatmul.mubr.msk.f32.gmra.mrb[12].mxu1 %vm82_vm0, %v58_v35 }
  0x27   :  { %1106 = vmatprep.mubr.msk.f32.mxu0 %vm82_vm0, %v27_v34  ;;  %1154 = vmatprep.mubr.msk.f32.mxu1 %vm82_vm0, %v59_v36 }
  0x2a   :  { %1107 = vmatmul.mubr.msk.f32.gmra.mrb[14].mxu0 %vm82_vm0, %v28_v37  ;;  %1155 = vmatmul.mubr.msk.f32.gmra.mrb[14].mxu1 %vm82_vm0, %v60_v39 }
  0x2b   :  { %1109 = vmatprep.mubr.msk.f32.mxu0 %vm82_vm0, %v29_v38  ;;  %1157 = vmatprep.mubr.msk.f32.mxu1 %vm82_vm0, %v61_v40 }
  0x2e   :  { %1110 = vmatmul.mubr.msk.f32.gmra.mrb[16].mxu0 %vm82_vm0, %v30_v41  ;;  %1158 = vmatmul.mubr.msk.f32.gmra.mrb[16].mxu1 %vm82_vm0, %v62_v43 }
  0x2f   :  { %1112 = vmatprep.mubr.msk.f32.mxu0 %vm82_vm0, %v31_v42  ;;  %1160 = vmatprep.mubr.msk.f32.mxu1 %vm82_vm0, %v63_v44 }
  0x32   :  { %1113 = vmatmul.mubr.msk.f32.gmra.mrb[18].mxu0 %vm82_vm0, %v32_v45  ;;  %1161 = vmatmul.mubr.msk.f32.gmra.mrb[18].mxu1 %vm82_vm0, %v64_v47 }
  0x33   :  { %1115 = vmatprep.mubr.msk.f32.mxu0 %vm82_vm0, %v33_v46  ;;  %1163 = vmatprep.mubr.msk.f32.mxu1 %vm82_vm0, %v65_v48 }
  0x36   :  { %1116 = vmatmul.mubr.msk.f32.gmra.mrb[20].mxu0 %vm82_vm0, %v34_v49  ;;  %1164 = vmatmul.mubr.msk.f32.gmra.mrb[20].mxu1 %vm82_vm0, %v66_v51 }
  0x37   :  { %1118 = vmatprep.mubr.msk.f32.mxu0 %vm82_vm0, %v35_v50  ;;  %1166 = vmatprep.mubr.msk.f32.mxu1 %vm82_vm0, %v67_v52 }
  0x3a   :  { %1119 = vmatmul.mubr.msk.f32.gmra.mrb[22].mxu0 %vm82_vm0, %v36_v53  ;;  %1167 = vmatmul.mubr.msk.f32.gmra.mrb[22].mxu1 %vm82_vm0, %v68_v55 }
  0x3b   :  { %1121 = vmatprep.mubr.msk.f32.mxu0 %vm82_vm0, %v37_v54  ;;  %1169 = vmatprep.mubr.msk.f32.mxu1 %vm82_vm0, %v69_v56 }
  0x3e   :  { %1122 = vmatmul.mubr.msk.f32.gmra.mrb[24].mxu0 %vm82_vm0, %v38_v57  ;;  %1170 = vmatmul.mubr.msk.f32.gmra.mrb[24].mxu1 %vm82_vm0, %v70_v59 }
  0x3f   :  { %1124 = vmatprep.mubr.msk.f32.mxu0 %vm82_vm0, %v39_v58  ;;  %1172 = vmatprep.mubr.msk.f32.mxu1 %vm82_vm0, %v71_v60 }
  0x42   :  { %1125 = vmatmul.mubr.msk.f32.gmra.mrb[26].mxu0 %vm82_vm0, %v40_v61  ;;  %1173 = vmatmul.mubr.msk.f32.gmra.mrb[26].mxu1 %vm82_vm0, %v72_v63 }
  0x43   :  { %1127 = vmatprep.mubr.msk.f32.mxu0 %vm82_vm0, %v41_v62  ;;  %1175 = vmatprep.mubr.msk.f32.mxu1 %vm82_vm0, %v73_v0 }
  0x46   :  { %1128 = vmatmul.mubr.msk.f32.gmra.mrb[28].mxu0 %vm82_vm0, %v42_v1  ;;  %1176 = vmatmul.mubr.msk.f32.gmra.mrb[28].mxu1 %vm82_vm0, %v74_v3 }
  0x47   :  { %1130 = vmatprep.mubr.msk.f32.mxu0 %vm82_vm0, %v43_v2  ;;  %1178 = vmatprep.mubr.msk.f32.mxu1 %vm82_vm0, %v75_v4 }
  0x4a   :  { %1131 = vmatmul.mubr.msk.f32.gmra.mrb[30].mxu0 %vm82_vm0, %v44_v5  ;;  %1179 = vmatmul.mubr.msk.f32.gmra.mrb[30].mxu1 %vm82_vm0, %v76_v6 }
  0xe1   :  { %v1087_v7 = vpop.f32.mrb[0].mxu0  ;;  %v1489_v10 = vpop.f32.mrb[0].mxu1 }
  0xe2   :  { %665 = vst [vmem:[%s1875_s2 + $0x8] sm:$0xff] %v1087_v7  ;;  %v798_v8 = vmul.f32 %v1087_v7, %v1087_v7  ;;  %v345_v9 = vpop.f32.mrb[1].mxu0  ;;  %697 = vst [vmem:[%s1875_s2 + $0x108] sm:$0xff] %v1489_v10  ;;  %v1498_v13 = vpop.f32.mrb[1].mxu1 }
  0xe3   :  { %664 = vst [vmem:[%s1875_s2] sm:$0xff] %v345_v9  ;;  %v728_v11 = vadd.f32 %v1087_v7, %v345_v9  ;;  %v797_v12 = vmul.f32 %v345_v9, %v345_v9  ;;  %696 = vst [vmem:[%s1875_s2 + $0x100] sm:$0xff] %v1498_v13 }
  0xe5   :  { %v861_v14 = vadd.f32 %v798_v8, %v797_v12  ;;  %v1090_v15 = vpop.f32.mrb[2].mxu0  ;;  %v1507_v17 = vpop.f32.mrb[2].mxu1 }
  0xe6   :  { %667 = vst [vmem:[%s1875_s2 + $0x18] sm:$0xff] %v1090_v15  ;;  %v355_v16 = vpop.f32.mrb[3].mxu0  ;;  %699 = vst [vmem:[%s1875_s2 + $0x118] sm:$0xff] %v1507_v17  ;;  %v1516_v20 = vpop.f32.mrb[3].mxu1  ;;  %v800_v21 = vmul.f32 %v1090_v15, %v1090_v15 }
  0xe7   :  { %666 = vst [vmem:[%s1875_s2 + $0x10] sm:$0xff] %v355_v16  ;;  %v729_v18 = vadd.f32 %v728_v11, %v355_v16  ;;  %v799_v19 = vmul.f32 %v355_v16, %v355_v16  ;;  %698 = vst [vmem:[%s1875_s2 + $0x110] sm:$0xff] %v1516_v20 }
  0xe9   :  { %v862_v22 = vadd.f32 %v861_v14, %v799_v19  ;;  %v1093_v23 = vpop.f32.mrb[4].mxu0  ;;  %v730_v24 = vadd.f32 %v1090_v15, %v729_v18  ;;  %v1525_v26 = vpop.f32.mrb[4].mxu1 }
  0xea   :  { %669 = vst [vmem:[%s1875_s2 + $0x28] sm:$0xff] %v1093_v23  ;;  %v365_v25 = vpop.f32.mrb[5].mxu0  ;;  %701 = vst [vmem:[%s1875_s2 + $0x128] sm:$0xff] %v1525_v26  ;;  %v1534_v30 = vpop.f32.mrb[5].mxu1  ;;  %v802_v31 = vmul.f32 %v1093_v23, %v1093_v23 }
  0xeb   :  { %668 = vst [vmem:[%s1875_s2 + $0x20] sm:$0xff] %v365_v25  ;;  %v731_v27 = vadd.f32 %v730_v24, %v365_v25  ;;  %v801_v28 = vmul.f32 %v365_v25, %v365_v25  ;;  %v863_v29 = vadd.f32 %v862_v22, %v800_v21  ;;  %700 = vst [vmem:[%s1875_s2 + $0x120] sm:$0xff] %v1534_v30 }
  0xed   :  { %v864_v32 = vadd.f32 %v863_v29, %v801_v28  ;;  %v1096_v33 = vpop.f32.mrb[6].mxu0  ;;  %v732_v34 = vadd.f32 %v1093_v23, %v731_v27  ;;  %v1543_v36 = vpop.f32.mrb[6].mxu1 }
  0xee   :  { %671 = vst [vmem:[%s1875_s2 + $0x38] sm:$0xff] %v1096_v33  ;;  %v375_v35 = vpop.f32.mrb[7].mxu0  ;;  %703 = vst [vmem:[%s1875_s2 + $0x138] sm:$0xff] %v1543_v36  ;;  %v1552_v40 = vpop.f32.mrb[7].mxu1  ;;  %v804_v41 = vmul.f32 %v1096_v33, %v1096_v33 }
  0xef   :  { %670 = vst [vmem:[%s1875_s2 + $0x30] sm:$0xff] %v375_v35  ;;  %v733_v37 = vadd.f32 %v732_v34, %v375_v35  ;;  %v803_v38 = vmul.f32 %v375_v35, %v375_v35  ;;  %v865_v39 = vadd.f32 %v864_v32, %v802_v31  ;;  %702 = vst [vmem:[%s1875_s2 + $0x130] sm:$0xff] %v1552_v40 }
  0xf1   :  { %v866_v42 = vadd.f32 %v865_v39, %v803_v38  ;;  %v1099_v43 = vpop.f32.mrb[8].mxu0  ;;  %v734_v44 = vadd.f32 %v1096_v33, %v733_v37  ;;  %v1561_v46 = vpop.f32.mrb[8].mxu1 }
  0xf2   :  { %673 = vst [vmem:[%s1875_s2 + $0x48] sm:$0xff] %v1099_v43  ;;  %v385_v45 = vpop.f32.mrb[9].mxu0  ;;  %705 = vst [vmem:[%s1875_s2 + $0x148] sm:$0xff] %v1561_v46  ;;  %v1570_v50 = vpop.f32.mrb[9].mxu1  ;;  %v806_v51 = vmul.f32 %v1099_v43, %v1099_v43 }
  0xf3   :  { %672 = vst [vmem:[%s1875_s2 + $0x40] sm:$0xff] %v385_v45  ;;  %v735_v47 = vadd.f32 %v734_v44, %v385_v45  ;;  %v805_v48 = vmul.f32 %v385_v45, %v385_v45  ;;  %v867_v49 = vadd.f32 %v866_v42, %v804_v41  ;;  %704 = vst [vmem:[%s1875_s2 + $0x140] sm:$0xff] %v1570_v50 }
  0xf5   :  { %v868_v52 = vadd.f32 %v867_v49, %v805_v48  ;;  %v1102_v53 = vpop.f32.mrb[10].mxu0  ;;  %v736_v54 = vadd.f32 %v1099_v43, %v735_v47  ;;  %v1579_v56 = vpop.f32.mrb[10].mxu1 }
  0xf6   :  { %675 = vst [vmem:[%s1875_s2 + $0x58] sm:$0xff] %v1102_v53  ;;  %v395_v55 = vpop.f32.mrb[11].mxu0  ;;  %707 = vst [vmem:[%s1875_s2 + $0x158] sm:$0xff] %v1579_v56  ;;  %v1588_v60 = vpop.f32.mrb[11].mxu1  ;;  %v808_v61 = vmul.f32 %v1102_v53, %v1102_v53 }
  0xf7   :  { %674 = vst [vmem:[%s1875_s2 + $0x50] sm:$0xff] %v395_v55  ;;  %v737_v57 = vadd.f32 %v736_v54, %v395_v55  ;;  %v807_v58 = vmul.f32 %v395_v55, %v395_v55  ;;  %v869_v59 = vadd.f32 %v868_v52, %v806_v51  ;;  %706 = vst [vmem:[%s1875_s2 + $0x150] sm:$0xff] %v1588_v60 }
  0xf9   :  { %v870_v62 = vadd.f32 %v869_v59, %v807_v58  ;;  %v1105_v63 = vpop.f32.mrb[12].mxu0  ;;  %v738_v0 = vadd.f32 %v1102_v53, %v737_v57  ;;  %v1597_v2 = vpop.f32.mrb[12].mxu1 }
  0xfa   :  { %677 = vst [vmem:[%s1875_s2 + $0x68] sm:$0xff] %v1105_v63  ;;  %v405_v1 = vpop.f32.mrb[13].mxu0  ;;  %709 = vst [vmem:[%s1875_s2 + $0x168] sm:$0xff] %v1597_v2  ;;  %v1606_v6 = vpop.f32.mrb[13].mxu1  ;;  %v810_v7 = vmul.f32 %v1105_v63, %v1105_v63 }
  0xfb   :  { %676 = vst [vmem:[%s1875_s2 + $0x60] sm:$0xff] %v405_v1  ;;  %v739_v3 = vadd.f32 %v738_v0, %v405_v1  ;;  %v809_v4 = vmul.f32 %v405_v1, %v405_v1  ;;  %v871_v5 = vadd.f32 %v870_v62, %v808_v61  ;;  %708 = vst [vmem:[%s1875_s2 + $0x160] sm:$0xff] %v1606_v6 }
  0xfd   :  { %v872_v8 = vadd.f32 %v871_v5, %v809_v4  ;;  %v1108_v9 = vpop.f32.mrb[14].mxu0  ;;  %v740_v11 = vadd.f32 %v1105_v63, %v739_v3  ;;  %v1615_v14 = vpop.f32.mrb[14].mxu1 }
  0xfe   :  { %679 = vst [vmem:[%s1875_s2 + $0x78] sm:$0xff] %v1108_v9  ;;  %v415_v12 = vpop.f32.mrb[15].mxu0  ;;  %711 = vst [vmem:[%s1875_s2 + $0x178] sm:$0xff] %v1615_v14  ;;  %v1624_v19 = vpop.f32.mrb[15].mxu1  ;;  %v812_v21 = vmul.f32 %v1108_v9, %v1108_v9 }
  0xff   :  { %678 = vst [vmem:[%s1875_s2 + $0x70] sm:$0xff] %v415_v12  ;;  %v741_v15 = vadd.f32 %v740_v11, %v415_v12  ;;  %v811_v16 = vmul.f32 %v415_v12, %v415_v12  ;;  %v873_v18 = vadd.f32 %v872_v8, %v810_v7  ;;  %710 = vst [vmem:[%s1875_s2 + $0x170] sm:$0xff] %v1624_v19 }
 0x101   :  { %v874_v22 = vadd.f32 %v873_v18, %v811_v16  ;;  %v1111_v23 = vpop.f32.mrb[16].mxu0  ;;  %v742_v24 = vadd.f32 %v1108_v9, %v741_v15  ;;  %v1633_v27 = vpop.f32.mrb[16].mxu1 }
 0x102   :  { %681 = vst [vmem:[%s1875_s2 + $0x88] sm:$0xff] %v1111_v23  ;;  %v425_v25 = vpop.f32.mrb[17].mxu0  ;;  %713 = vst [vmem:[%s1875_s2 + $0x188] sm:$0xff] %v1633_v27  ;;  %v1642_v32 = vpop.f32.mrb[17].mxu1  ;;  %v814_v33 = vmul.f32 %v1111_v23, %v1111_v23 }
 0x103   :  { %680 = vst [vmem:[%s1875_s2 + $0x80] sm:$0xff] %v425_v25  ;;  %v743_v28 = vadd.f32 %v742_v24, %v425_v25  ;;  %v813_v29 = vmul.f32 %v425_v25, %v425_v25  ;;  %v875_v31 = vadd.f32 %v874_v22, %v812_v21  ;;  %712 = vst [vmem:[%s1875_s2 + $0x180] sm:$0xff] %v1642_v32 }
 0x105   :  { %v876_v34 = vadd.f32 %v875_v31, %v813_v29  ;;  %v1114_v35 = vpop.f32.mrb[18].mxu0  ;;  %v744_v37 = vadd.f32 %v1111_v23, %v743_v28  ;;  %v1651_v39 = vpop.f32.mrb[18].mxu1 }
 0x106   :  { %683 = vst [vmem:[%s1875_s2 + $0x98] sm:$0xff] %v1114_v35  ;;  %v435_v38 = vpop.f32.mrb[19].mxu0  ;;  %715 = vst [vmem:[%s1875_s2 + $0x198] sm:$0xff] %v1651_v39  ;;  %v1660_v44 = vpop.f32.mrb[19].mxu1  ;;  %v816_v45 = vmul.f32 %v1114_v35, %v1114_v35 }
 0x107   :  { %682 = vst [vmem:[%s1875_s2 + $0x90] sm:$0xff] %v435_v38  ;;  %v745_v41 = vadd.f32 %v744_v37, %v435_v38  ;;  %v815_v42 = vmul.f32 %v435_v38, %v435_v38  ;;  %v877_v43 = vadd.f32 %v876_v34, %v814_v33  ;;  %714 = vst [vmem:[%s1875_s2 + $0x190] sm:$0xff] %v1660_v44 }
 0x109   :  { %v878_v47 = vadd.f32 %v877_v43, %v815_v42  ;;  %v1117_v48 = vpop.f32.mrb[20].mxu0  ;;  %v746_v49 = vadd.f32 %v1114_v35, %v745_v41  ;;  %v1669_v52 = vpop.f32.mrb[20].mxu1 }
 0x10a   :  { %685 = vst [vmem:[%s1875_s2 + $0xa8] sm:$0xff] %v1117_v48  ;;  %v445_v51 = vpop.f32.mrb[21].mxu0  ;;  %717 = vst [vmem:[%s1875_s2 + $0x1a8] sm:$0xff] %v1669_v52  ;;  %v1678_v57 = vpop.f32.mrb[21].mxu1  ;;  %v818_v58 = vmul.f32 %v1117_v48, %v1117_v48 }
 0x10b   :  { %684 = vst [vmem:[%s1875_s2 + $0xa0] sm:$0xff] %v445_v51  ;;  %v747_v53 = vadd.f32 %v746_v49, %v445_v51  ;;  %v817_v54 = vmul.f32 %v445_v51, %v445_v51  ;;  %v879_v55 = vadd.f32 %v878_v47, %v816_v45  ;;  %716 = vst [vmem:[%s1875_s2 + $0x1a0] sm:$0xff] %v1678_v57 }
 0x10d   :  { %v880_v59 = vadd.f32 %v879_v55, %v817_v54  ;;  %v1120_v61 = vpop.f32.mrb[22].mxu0  ;;  %v748_v62 = vadd.f32 %v1117_v48, %v747_v53  ;;  %v1687_v0 = vpop.f32.mrb[22].mxu1 }
 0x10e   :  { %687 = vst [vmem:[%s1875_s2 + $0xb8] sm:$0xff] %v1120_v61  ;;  %v455_v63 = vpop.f32.mrb[23].mxu0  ;;  %719 = vst [vmem:[%s1875_s2 + $0x1b8] sm:$0xff] %v1687_v0  ;;  %v1696_v5 = vpop.f32.mrb[23].mxu1  ;;  %v820_v7 = vmul.f32 %v1120_v61, %v1120_v61 }
 0x10f   :  { %686 = vst [vmem:[%s1875_s2 + $0xb0] sm:$0xff] %v455_v63  ;;  %v749_v1 = vadd.f32 %v748_v62, %v455_v63  ;;  %v819_v3 = vmul.f32 %v455_v63, %v455_v63  ;;  %v881_v4 = vadd.f32 %v880_v59, %v818_v58  ;;  %718 = vst [vmem:[%s1875_s2 + $0x1b0] sm:$0xff] %v1696_v5 }
 0x111   :  { %v882_v8 = vadd.f32 %v881_v4, %v819_v3  ;;  %v1123_v9 = vpop.f32.mrb[24].mxu0  ;;  %v750_v11 = vadd.f32 %v1120_v61, %v749_v1  ;;  %v1705_v15 = vpop.f32.mrb[24].mxu1 }
 0x112   :  { %689 = vst [vmem:[%s1875_s2 + $0xc8] sm:$0xff] %v1123_v9  ;;  %v465_v12 = vpop.f32.mrb[25].mxu0  ;;  %721 = vst [vmem:[%s1875_s2 + $0x1c8] sm:$0xff] %v1705_v15  ;;  %v1714_v22 = vpop.f32.mrb[25].mxu1  ;;  %v822_v23 = vmul.f32 %v1123_v9, %v1123_v9 }
 0x113   :  { %688 = vst [vmem:[%s1875_s2 + $0xc0] sm:$0xff] %v465_v12  ;;  %v751_v16 = vadd.f32 %v750_v11, %v465_v12  ;;  %v821_v18 = vmul.f32 %v465_v12, %v465_v12  ;;  %v883_v21 = vadd.f32 %v882_v8, %v820_v7  ;;  %720 = vst [vmem:[%s1875_s2 + $0x1c0] sm:$0xff] %v1714_v22 }
 0x114   :  { %v829_v11 = vmul.f32 %v1498_v13, %v1498_v13 }
 0x115   :  { %v884_v24 = vadd.f32 %v883_v21, %v821_v18  ;;  %v1126_v25 = vpop.f32.mrb[26].mxu0  ;;  %v752_v28 = vadd.f32 %v1123_v9, %v751_v16  ;;  %v1723_v31 = vpop.f32.mrb[26].mxu1  ;;  %v830_v18 = vmul.f32 %v1489_v10, %v1489_v10 }
 0x116   :  { %691 = vst [vmem:[%s1875_s2 + $0xd8] sm:$0xff] %v1126_v25  ;;  %v475_v29 = vpop.f32.mrb[27].mxu0  ;;  %723 = vst [vmem:[%s1875_s2 + $0x1d8] sm:$0xff] %v1723_v31  ;;  %v1732_v37 = vpop.f32.mrb[27].mxu1  ;;  %v824_v38 = vmul.f32 %v1126_v25, %v1126_v25 }
 0x117   :  { %690 = vst [vmem:[%s1875_s2 + $0xd0] sm:$0xff] %v475_v29  ;;  %v753_v33 = vadd.f32 %v752_v28, %v475_v29  ;;  %v823_v34 = vmul.f32 %v475_v29, %v475_v29  ;;  %v885_v35 = vadd.f32 %v884_v24, %v822_v23  ;;  %722 = vst [vmem:[%s1875_s2 + $0x1d0] sm:$0xff] %v1732_v37 }
 0x118   :  { %v831_v24 = vmul.f32 %v1516_v20, %v1516_v20  ;;  %v832_v29 = vmul.f32 %v1507_v17, %v1507_v17 }
 0x119   :  { %v886_v41 = vadd.f32 %v885_v35, %v823_v34  ;;  %v1129_v42 = vpop.f32.mrb[28].mxu0  ;;  %v754_v43 = vadd.f32 %v1126_v25, %v753_v33  ;;  %v1741_v47 = vpop.f32.mrb[28].mxu1 }
 0x11a   :  { %693 = vst [vmem:[%s1875_s2 + $0xe8] sm:$0xff] %v1129_v42  ;;  %v485_v45 = vpop.f32.mrb[29].mxu0  ;;  %725 = vst [vmem:[%s1875_s2 + $0x1e8] sm:$0xff] %v1741_v47  ;;  %v1750_v53 = vpop.f32.mrb[29].mxu1  ;;  %v826_v54 = vmul.f32 %v1129_v42, %v1129_v42 }
 0x11b   :  { %692 = vst [vmem:[%s1875_s2 + $0xe0] sm:$0xff] %v485_v45  ;;  %v755_v48 = vadd.f32 %v754_v43, %v485_v45  ;;  %v825_v49 = vmul.f32 %v485_v45, %v485_v45  ;;  %v887_v51 = vadd.f32 %v886_v41, %v824_v38  ;;  %724 = vst [vmem:[%s1875_s2 + $0x1e0] sm:$0xff] %v1750_v53 }
 0x11d   :  { %v888_v55 = vadd.f32 %v887_v51, %v825_v49  ;;  %v1132_v58 = vpop.f32.mrb[30].mxu0  ;;  %v756_v59 = vadd.f32 %v1129_v42, %v755_v48  ;;  %v1759_v62 = vpop.f32.mrb[30].mxu1 }
 0x11e   :  { %695 = vst [vmem:[%s1875_s2 + $0xf8] sm:$0xff] %v1132_v58  ;;  %v495_v61 = vpop.f32.mrb[31].mxu0  ;;  %727 = vst [vmem:[%s1875_s2 + $0x1f8] sm:$0xff] %v1759_v62  ;;  %v1768_v4 = vpop.f32.mrb[31].mxu1  ;;  %v828_v7 = vmul.f32 %v1132_v58, %v1132_v58 }
 0x11f   :  { %694 = vst [vmem:[%s1875_s2 + $0xf0] sm:$0xff] %v495_v61  ;;  %v757_v63 = vadd.f32 %v756_v59, %v495_v61  ;;  %v827_v1 = vmul.f32 %v495_v61, %v495_v61  ;;  %v889_v3 = vadd.f32 %v888_v55, %v826_v54  ;;  %726 = vst [vmem:[%s1875_s2 + $0x1f0] sm:$0xff] %v1768_v4 }
 0x121   :  { %v758_v8 = vadd.f32 %v1132_v58, %v757_v63  ;;  %v890_v9 = vadd.f32 %v889_v3, %v827_v1 }
 0x123   :  { %v891_v12 = vadd.f32 %v890_v9, %v828_v7  ;;  %v759_v16 = vadd.f32 %v758_v8, %v1498_v13  ;;  %v833_v13 = vmul.f32 %v1534_v30, %v1534_v30 }
 0x125   :  { %v892_v21 = vadd.f32 %v891_v12, %v829_v11  ;;  %v760_v23 = vadd.f32 %v1489_v10, %v759_v16  ;;  %v834_v10 = vmul.f32 %v1525_v26, %v1525_v26 }
 0x127   :  { %v761_v25 = vadd.f32 %v760_v23, %v1516_v20  ;;  %v893_v28 = vadd.f32 %v892_v21, %v830_v18  ;;  %v835_v20 = vmul.f32 %v1552_v40, %v1552_v40 }
 0x129   :  { %v894_v33 = vadd.f32 %v893_v28, %v831_v24  ;;  %v762_v34 = vadd.f32 %v1507_v17, %v761_v25  ;;  %v836_v17 = vmul.f32 %v1543_v36, %v1543_v36 }
 0x12b   :  { %v763_v35 = vadd.f32 %v762_v34, %v1534_v30  ;;  %v895_v38 = vadd.f32 %v894_v33, %v832_v29  ;;  %v837_v30 = vmul.f32 %v1570_v50, %v1570_v50 }
 0x12d   :  { %v896_v41 = vadd.f32 %v895_v38, %v833_v13  ;;  %v764_v42 = vadd.f32 %v1525_v26, %v763_v35  ;;  %v838_v26 = vmul.f32 %v1561_v46, %v1561_v46 }
 0x12f   :  { %v765_v43 = vadd.f32 %v764_v42, %v1552_v40  ;;  %v897_v45 = vadd.f32 %v896_v41, %v834_v10  ;;  %v839_v40 = vmul.f32 %v1588_v60, %v1588_v60 }
 0x131   :  { %v898_v48 = vadd.f32 %v897_v45, %v835_v20  ;;  %v766_v49 = vadd.f32 %v1543_v36, %v765_v43  ;;  %v840_v36 = vmul.f32 %v1579_v56, %v1579_v56 }
 0x133   :  { %v767_v51 = vadd.f32 %v766_v49, %v1570_v50  ;;  %v899_v54 = vadd.f32 %v898_v48, %v836_v17  ;;  %v841_v50 = vmul.f32 %v1606_v6, %v1606_v6 }
 0x135   :  { %v900_v55 = vadd.f32 %v899_v54, %v837_v30  ;;  %v768_v58 = vadd.f32 %v1561_v46, %v767_v51  ;;  %v842_v46 = vmul.f32 %v1597_v2, %v1597_v2 }
 0x137   :  { %v769_v59 = vadd.f32 %v768_v58, %v1588_v60  ;;  %v901_v61 = vadd.f32 %v900_v55, %v838_v26  ;;  %v843_v60 = vmul.f32 %v1624_v19, %v1624_v19 }
 0x139   :  { %v902_v63 = vadd.f32 %v901_v61, %v839_v40  ;;  %v770_v1 = vadd.f32 %v1579_v56, %v769_v59  ;;  %v844_v56 = vmul.f32 %v1615_v14, %v1615_v14 }
 0x13b   :  { %v771_v3 = vadd.f32 %v770_v1, %v1606_v6  ;;  %v903_v7 = vadd.f32 %v902_v63, %v840_v36  ;;  %v845_v6 = vmul.f32 %v1642_v32, %v1642_v32 }
 0x13d   :  { %v904_v8 = vadd.f32 %v903_v7, %v841_v50  ;;  %v772_v9 = vadd.f32 %v1597_v2, %v771_v3  ;;  %v846_v2 = vmul.f32 %v1633_v27, %v1633_v27 }
 0x13f   :  { %v773_v11 = vadd.f32 %v772_v9, %v1624_v19  ;;  %v905_v12 = vadd.f32 %v904_v8, %v842_v46  ;;  %v847_v19 = vmul.f32 %v1660_v44, %v1660_v44 }
 0x141   :  { %v906_v16 = vadd.f32 %v905_v12, %v843_v60  ;;  %v774_v18 = vadd.f32 %v1615_v14, %v773_v11  ;;  %v848_v14 = vmul.f32 %v1651_v39, %v1651_v39 }
 0x143   :  { %v775_v21 = vadd.f32 %v774_v18, %v1642_v32  ;;  %v907_v23 = vadd.f32 %v906_v16, %v844_v56  ;;  %v849_v32 = vmul.f32 %v1678_v57, %v1678_v57 }
 0x145   :  { %v908_v24 = vadd.f32 %v907_v23, %v845_v6  ;;  %v776_v25 = vadd.f32 %v1633_v27, %v775_v21  ;;  %v850_v27 = vmul.f32 %v1669_v52, %v1669_v52 }
 0x147   :  { %v777_v28 = vadd.f32 %v776_v25, %v1660_v44  ;;  %v909_v29 = vadd.f32 %v908_v24, %v846_v2  ;;  %v851_v44 = vmul.f32 %v1696_v5, %v1696_v5 }
 0x149   :  { %v910_v33 = vadd.f32 %v909_v29, %v847_v19  ;;  %v778_v34 = vadd.f32 %v1651_v39, %v777_v28  ;;  %v852_v39 = vmul.f32 %v1687_v0, %v1687_v0 }
 0x14b   :  { %v779_v13 = vadd.f32 %v778_v34, %v1678_v57  ;;  %v911_v35 = vadd.f32 %v910_v33, %v848_v14  ;;  %v853_v57 = vmul.f32 %v1714_v22, %v1714_v22 }
 0x14d   :  { %v912_v38 = vadd.f32 %v911_v35, %v849_v32  ;;  %v780_v10 = vadd.f32 %v1669_v52, %v779_v13  ;;  %v854_v52 = vmul.f32 %v1705_v15, %v1705_v15 }
 0x14f   :  { %v781_v41 = vadd.f32 %v780_v10, %v1696_v5  ;;  %v913_v42 = vadd.f32 %v912_v38, %v850_v27  ;;  %v855_v5 = vmul.f32 %v1732_v37, %v1732_v37 }
 0x151   :  { %v914_v20 = vadd.f32 %v913_v42, %v851_v44  ;;  %v782_v43 = vadd.f32 %v1687_v0, %v781_v41  ;;  %v856_v0 = vmul.f32 %v1723_v31, %v1723_v31 }
 0x153   :  { %v783_v45 = vadd.f32 %v782_v43, %v1714_v22  ;;  %v915_v17 = vadd.f32 %v914_v20, %v852_v39  ;;  %v857_v22 = vmul.f32 %v1750_v53, %v1750_v53 }
 0x155   :  { %v916_v48 = vadd.f32 %v915_v17, %v853_v57  ;;  %v784_v49 = vadd.f32 %v1705_v15, %v783_v45  ;;  %v858_v15 = vmul.f32 %v1741_v47, %v1741_v47 }
 0x157   :  { %v785_v30 = vadd.f32 %v784_v49, %v1732_v37  ;;  %v917_v51 = vadd.f32 %v916_v48, %v854_v52  ;;  %v859_v37 = vmul.f32 %v1768_v4, %v1768_v4 }
 0x159   :  { %v918_v54 = vadd.f32 %v917_v51, %v855_v5  ;;  %v786_v26 = vadd.f32 %v1723_v31, %v785_v30  ;;  %v860_v31 = vmul.f32 %v1759_v62, %v1759_v62 }
 0x15b   :  { %v787_v55 = vadd.f32 %v786_v26, %v1750_v53  ;;  %v919_v58 = vadd.f32 %v918_v54, %v856_v0 }
 0x15d   :  { %v920_v40 = vadd.f32 %v919_v58, %v857_v22  ;;  %v788_v59 = vadd.f32 %v1741_v47, %v787_v55 }
 0x15f   :  { %v789_v61 = vadd.f32 %v788_v59, %v1768_v4  ;;  %v921_v36 = vadd.f32 %v920_v40, %v858_v15 }
 0x161   :  { %v790_v63 = vadd.f32 %v1759_v62, %v789_v61  ;;  %v922_v1 = vadd.f32 %v921_v36, %v859_v37 }
 0x163   :  { %v791_v53 = vrot.slane %v790_v63, 4  ;;  %v923_v50 = vadd.f32 %v922_v1, %v860_v31 }
 0x165   :  { %v792_v3 = vadd.f32 %v791_v53, %v790_v63  ;;  %v924_v7 = vrot.slane %v923_v50, 4 }
 0x167   :  { %v793_v46 = vrot.slane %v792_v3, 2  ;;  %v925_v8 = vadd.f32 %v924_v7, %v923_v50 }
 0x169   :  { %v794_v9 = vadd.f32 %v793_v46, %v792_v3  ;;  %v926_v47 = vrot.slane %v925_v8, 2 }
 0x16b   :  { %v795_v60 = vrot.slane %v794_v9, 1  ;;  %v927_v11 = vadd.f32 %v926_v47, %v925_v8 }
 0x16d   :  { %v928_v12 = vrot.slane %v927_v11, 1  ;;  %v796_v4 = vadd.f32 %v795_v60, %v794_v9 }
 0x16f   :  { %v929_v56 = vadd.f32 %v928_v12, %v927_v11 }
 0x171   :  { %v931_v16 = vsel %vm930_vm2, %v796_v4, %v929_v56 }
 0x172   :  { %932 = vst [vmem:[%s1876_s3] sm:$0x3] %v931_v16 }

</bundles_post_ra>
